<compile_context>
chip_gen: v6e
topology: v6e:2x2x1
jax: 0.10.0
libtpu: 0.0.40
codegen_flags: <defaults>
</compile_context>

<pallas_src>
import math

import jax
import jax.numpy as jnp
from jax.experimental import pallas as pl
from jax.experimental.pallas import tpu as pltpu

# ----------------------------- configuration --------------------------------
SEQ_LEN = 8        # L
BATCH = 2          # N
EMBED_DIM = 32     # E
NUM_HEADS = 4      # H
FF_DIM = 64        # F
LN_EPS = 1e-5
LANES = 128


# ------------------------------- kernel -------------------------------------
def _transformer_block_kernel(x_ref, w2d_ref, wout3_ref, misc_ref, out_ref):
    # x_ref: (R, E) f32 with R = L*N and row r = (l, n) = (r // N, r % N)
    R, E = x_ref.shape
    H, hd, _ = wout3_ref.shape
    F = w2d_ref.shape[0] - E

    x = x_ref[...]                        # (R, E) f32
    misc = misc_ref[...]                  # (8 + R, 128) f32

    b_qkv = misc[0:1, :]                  # (1, 128); cols 3E: are zero
    bo    = misc[1:2, :E]
    b1    = misc[2:3, :F]
    b2    = misc[3:4, :E]
    g1    = misc[4:5, :E]
    bt1   = misc[5:6, :E]
    g2    = misc[6:7, :E]
    bt2   = misc[7:8, :E]
    mask  = misc[8:8 + R, :R]             # (R, R) additive batch block mask

    # ---- fused QKV projection: one bf16 MXU matmul over a full 128-lane tile.
    # 1/sqrt(hd) is folded into the Q columns / bias at pack time.
    qkv = jnp.dot(x.astype(jnp.bfloat16), w2d_ref[:E, :],
                  preferred_element_type=jnp.float32) + b_qkv        # (R, 128)

    # ---- head-batched q/k/v: (H, R, hd) via static lane slices + leading stack
    def split_heads(off):
        return jnp.stack(
            [qkv[:, off + h * hd: off + (h + 1) * hd] for h in range(H)], axis=0)

    q3 = split_heads(0)        # (H, R, hd)
    k3 = split_heads(E)
    v3 = split_heads(2 * E)

    # ---- one batched score matmul + ONE softmax for all heads (f32 math)
    s = jnp.einsum("hrd,hcd->hrc", q3, k3,
                   preferred_element_type=jnp.float32) + mask        # (H, R, R)
    s = s - jnp.max(s, axis=-1, keepdims=True)
    p = jnp.exp(s)
    inv = pl.reciprocal(jnp.sum(p, axis=-1, keepdims=True), approx=True)  # EUP

    # PV matmul first, then normalize the small (H, R, hd) output
    o3 = jnp.einsum("hrc,hcd->hrd", p, v3,
                    preferred_element_type=jnp.float32) * inv        # (H, R, hd)

    # ---- output projection fused over heads (no concat, no scratch):
    #      attn = sum_h o3[h] @ Wout[h]  + bo
    attn = jnp.sum(
        jnp.einsum("hrd,hde->hre", o3.astype(jnp.bfloat16), wout3_ref[...],
                   preferred_element_type=jnp.float32),
        axis=0) + bo                                                 # (R, E)

    def layernorm(y, gamma, beta):
        mu = jnp.mean(y, axis=-1, keepdims=True)
        var = jnp.mean(jnp.square(y - mu), axis=-1, keepdims=True)
        return (y - mu) * jax.lax.rsqrt(var + LN_EPS) * gamma + beta

    # ---- residual + LayerNorm 1 ----
    y = layernorm(x + attn, g1, bt1)

    # ---- feed-forward: Linear(E->F) -> ReLU -> Linear(F->E), bf16 weights ----
    h1 = jnp.dot(y.astype(jnp.bfloat16), w2d_ref[E:2 * E, :F],
                 preferred_element_type=jnp.float32) + b1
    h1 = jnp.maximum(h1, 0.0)
    ff = jnp.dot(h1.astype(jnp.bfloat16), w2d_ref[E:E + F, F:F + E],
                 preferred_element_type=jnp.float32) + b2

    # ---- residual + LayerNorm 2 ----
    out_ref[...] = layernorm(y + ff, g2, bt2).astype(out_ref.dtype)


# --------------------------- parameter packing --------------------------------
def pack_params(params, num_heads, seq_len, batch):
    """One-time repack of PyTorch-layout params into kernel-friendly layout."""
    E = params["wq"].shape[0]
    F = params["w1"].shape[0]
    hd = E // num_heads
    scale = 1.0 / math.sqrt(hd)
    R = seq_len * batch
    assert 3 * E <= LANES and F + E <= LANES and R <= LANES

    # ---- 2-D weight slab (E+F, 128), bf16, lane dense ----
    # rows 0:E          cols 0:3E   -> [Wq*scale | Wk | Wv]^T   (in, out)
    # rows E:2E         cols 0:F    -> W1^T                     (E, F)
    # rows E:E+F        cols F:F+E  -> W2^T                     (F, E)
    w_in = jnp.concatenate(
        [params["wq"] * scale, params["wk"], params["wv"]], axis=0).T   # (E, 3E)
    slab = jnp.zeros((E + F, LANES), jnp.float32)
    slab = slab.at[:E, :3 * E].set(w_in)
    slab = slab.at[E:2 * E, :F].set(params["w1"].T)
    slab = slab.at[E:E + F, F:F + E].set(params["w2"].T)
    w2d = slab.astype(jnp.bfloat16)

    # ---- per-head output projection, pre-reshaped on the host: (H, hd, E) ----
    w_out3 = params["wo"].T.reshape(num_heads, hd, E).astype(jnp.bfloat16)

    # ---- misc slab: 8 bias/LN rows + (R, R) batch block mask, f32 ----
    def padrow(v):
        r = jnp.zeros((1, LANES), jnp.float32)
        return r.at[:, :v.shape[1]].set(v.astype(jnp.float32))

    b_qkv = jnp.concatenate(
        [params["bq"] * scale, params["bk"], params["bv"]], axis=1)     # (1, 3E)
    vec = jnp.concatenate(
        [padrow(b_qkv), padrow(params["bo"]), padrow(params["b1"]),
         padrow(params["b2"]), padrow(params["g1"]), padrow(params["beta1"]),
         padrow(params["g2"]), padrow(params["beta2"])], axis=0)        # (8, 128)

    rb = jnp.arange(R, dtype=jnp.int32) % batch                         # row r -> batch r % N
    mask = jnp.where(rb[:, None] == rb[None, :], 0.0, -1e30).astype(jnp.float32)
    mask_rows = jnp.zeros((R, LANES), jnp.float32).at[:, :R].set(mask)
    misc = jnp.concatenate([vec, mask_rows], axis=0)                    # (8+R, 128)

    return {"w2d": w2d, "w_out3": w_out3, "misc": misc}


# ------------------------------- wrapper -------------------------------------
def transformer_block_forward(x, packed):
    """x: (L, N, E) float32 (PyTorch nn.MultiheadAttention default layout)."""
    L, N, E = x.shape
    R = L * N

    # contiguous reshape (free) -- no transpose, no extra HBM round trip
    x2 = x.reshape(R, E)

    vmem = pl.BlockSpec(memory_space=pltpu.MemorySpace.VMEM)
    out = pl.pallas_call(
        _transformer_block_kernel,
        out_shape=jax.ShapeDtypeStruct((R, E), x.dtype),
        in_specs=[vmem, vmem, vmem, vmem],
        out_specs=vmem,
    )(x2, packed["w2d"], packed["w_out3"], packed["misc"])

    return out.reshape(L, N, E)        # contiguous reshape (free)


# --------------------------- pure-JAX reference ------------------------------
def reference_forward(x, params, num_heads):
    L, N, E = x.shape
    hd = E // num_heads

    def linear(a, w, b):
        return jnp.einsum("...e,fe->...f", a, w) + b[0]

    q = linear(x, params["wq"], params["bq"])
    k = linear(x, params["wk"], params["bk"])
    v = linear(x, params["wv"], params["bv"])
    qh = q.reshape(L, N, num_heads, hd)
    kh = k.reshape(L, N, num_heads, hd)
    vh = v.reshape(L, N, num_heads, hd)
    s = jnp.einsum("lnhd,mnhd->nhlm", qh, kh) / math.sqrt(hd)
    p = jax.nn.softmax(s, axis=-1)
    o = jnp.einsum("nhlm,mnhd->lnhd", p, vh).reshape(L, N, E)
    o = linear(o, params["wo"], params["bo"])

    def ln(y, g, b):
        mu = y.mean(-1, keepdims=True)
        var = jnp.square(y - mu).mean(-1, keepdims=True)
        return (y - mu) * jax.lax.rsqrt(var + LN_EPS) * g[0] + b[0]

    y = ln(x + o, params["g1"], params["beta1"])
    h1 = jax.nn.relu(linear(y, params["w1"], params["b1"]))
    ff = linear(h1, params["w2"], params["b2"])
    return ln(y + ff, params["g2"], params["beta2"])


# --------------------------- parameter construction --------------------------
def init_params(key, embed_dim, ff_dim):
    ks = jax.random.split(key, 8)
    s = 0.1
    f32 = jnp.float32
    params = {
        "wq": jax.random.normal(ks[0], (embed_dim, embed_dim), f32) * s,
        "wk": jax.random.normal(ks[1], (embed_dim, embed_dim), f32) * s,
        "wv": jax.random.normal(ks[2], (embed_dim, embed_dim), f32) * s,
        "bq": jax.random.normal(ks[3], (1, embed_dim), f32) * s,
        "bk": jax.random.normal(ks[4], (1, embed_dim), f32) * s,
        "bv": jax.random.normal(ks[5], (1, embed_dim), f32) * s,
        "wo": jax.random.normal(ks[6], (embed_dim, embed_dim), f32) * s,
        "bo": jnp.zeros((1, embed_dim), f32),
        "g1": jnp.ones((1, embed_dim), f32),
        "beta1": jnp.zeros((1, embed_dim), f32),
        "w1": jax.random.normal(ks[7], (ff_dim, embed_dim), f32) * s,
        "b1": jnp.zeros((1, ff_dim), f32),
        "w2": jax.random.normal(jax.random.fold_in(key, 99),
                                (embed_dim, ff_dim), f32) * s,
        "b2": jnp.zeros((1, embed_dim), f32),
        "g2": jnp.ones((1, embed_dim), f32),
        "beta2": jnp.zeros((1, embed_dim), f32),
    }
    return params


# ----------------------------------- main ------------------------------------
if __name__ == "__main__":
    key = jax.random.PRNGKey(0)
    pkey, xkey = jax.random.split(key)

    params = init_params(pkey, EMBED_DIM, FF_DIM)
    packed = pack_params(params, NUM_HEADS, SEQ_LEN, BATCH)   # one-time repack
    x = jax.random.normal(xkey, (SEQ_LEN, BATCH, EMBED_DIM), jnp.float32)

    out = transformer_block_forward(x, packed)
    out = jax.block_until_ready(out)

    ref = reference_forward(x, params, NUM_HEADS)
    assert out.shape == (SEQ_LEN, BATCH, EMBED_DIM)
    assert bool(jnp.all(jnp.isfinite(out)))
    # bf16 weight operands (f32 accumulate) => relaxed tolerance vs f32 reference
    assert jnp.allclose(out, ref, atol=3e-2, rtol=3e-2), (
        float(jnp.max(jnp.abs(out - ref))))

    print("KERNEL_OK")
</pallas_src>

<mosaic_0001>
module attributes {stable_mosaic.version = 11 : i64} {
  func.func @_transformer_block_kernel(%arg0: memref<16x32xf32, #tpu.memory_space<vmem>>, %arg1: memref<96x128xbf16, #tpu.memory_space<vmem>>, %arg2: memref<4x8x32xbf16, #tpu.memory_space<vmem>>, %arg3: memref<24x128xf32, #tpu.memory_space<vmem>>, %arg4: memref<16x32xf32, #tpu.memory_space<vmem>>) attributes {dimension_semantics = [], scalar_prefetch = 0 : i64, scratch_operands = 0 : i64, tpu.core_type = #tpu.core_type<tc>} {
    %c0 = arith.constant 0 : index
    %c0_0 = arith.constant 0 : index
    %0 = vector.load %arg0[%c0, %c0_0] : memref<16x32xf32, #tpu.memory_space<vmem>>, vector<16x32xf32>
    %c0_1 = arith.constant 0 : index
    %c0_2 = arith.constant 0 : index
    %1 = vector.load %arg3[%c0_1, %c0_2] : memref<24x128xf32, #tpu.memory_space<vmem>>, vector<24x128xf32>
    %2 = vector.extract_strided_slice %1 {offsets = [0, 0], sizes = [1, 128], strides = [1, 1]} : vector<24x128xf32> to vector<1x128xf32>
    %3 = vector.extract_strided_slice %1 {offsets = [1, 0], sizes = [1, 32], strides = [1, 1]} : vector<24x128xf32> to vector<1x32xf32>
    %4 = vector.extract_strided_slice %1 {offsets = [2, 0], sizes = [1, 64], strides = [1, 1]} : vector<24x128xf32> to vector<1x64xf32>
    %5 = vector.extract_strided_slice %1 {offsets = [3, 0], sizes = [1, 32], strides = [1, 1]} : vector<24x128xf32> to vector<1x32xf32>
    %6 = vector.extract_strided_slice %1 {offsets = [4, 0], sizes = [1, 32], strides = [1, 1]} : vector<24x128xf32> to vector<1x32xf32>
    %7 = vector.extract_strided_slice %1 {offsets = [5, 0], sizes = [1, 32], strides = [1, 1]} : vector<24x128xf32> to vector<1x32xf32>
    %8 = vector.extract_strided_slice %1 {offsets = [6, 0], sizes = [1, 32], strides = [1, 1]} : vector<24x128xf32> to vector<1x32xf32>
    %9 = vector.extract_strided_slice %1 {offsets = [7, 0], sizes = [1, 32], strides = [1, 1]} : vector<24x128xf32> to vector<1x32xf32>
    %10 = vector.extract_strided_slice %1 {offsets = [8, 0], sizes = [16, 16], strides = [1, 1]} : vector<24x128xf32> to vector<16x16xf32>
    %11 = arith.truncf %0 : vector<16x32xf32> to vector<16x32xbf16>
    %c0_3 = arith.constant 0 : index
    %c0_4 = arith.constant 0 : index
    %12 = vector.load %arg1[%c0_3, %c0_4] : memref<96x128xbf16, #tpu.memory_space<vmem>>, vector<32x128xbf16>
    %cst = arith.constant dense<0.000000e+00> : vector<16x128xf32>
    %13 = tpu.matmul %11, %12, %cst {dimension_numbers = #tpu.dot_dimension_numbers<[1], [0], [0], [1], [0, 0, 1, 1], [], []>} : vector<16x32xbf16>, vector<32x128xbf16>, vector<16x128xf32> -> vector<16x128xf32>
    %14 = vector.broadcast %2 : vector<1x128xf32> to vector<16x128xf32>
    %15 = arith.addf %13, %14 : vector<16x128xf32>
    %16 = vector.extract_strided_slice %15 {offsets = [0, 0], sizes = [16, 8], strides = [1, 1]} : vector<16x128xf32> to vector<16x8xf32>
    %17 = vector.extract_strided_slice %15 {offsets = [0, 8], sizes = [16, 8], strides = [1, 1]} : vector<16x128xf32> to vector<16x8xf32>
    %18 = vector.extract_strided_slice %15 {offsets = [0, 16], sizes = [16, 8], strides = [1, 1]} : vector<16x128xf32> to vector<16x8xf32>
    %19 = vector.extract_strided_slice %15 {offsets = [0, 24], sizes = [16, 8], strides = [1, 1]} : vector<16x128xf32> to vector<16x8xf32>
    %20 = vector.shape_cast %16 : vector<16x8xf32> to vector<1x16x8xf32>
    %21 = vector.shape_cast %17 : vector<16x8xf32> to vector<1x16x8xf32>
    %22 = vector.shape_cast %18 : vector<16x8xf32> to vector<1x16x8xf32>
    %23 = vector.shape_cast %19 : vector<16x8xf32> to vector<1x16x8xf32>
    %24 = tpu.concatenate %20, %21, %22, %23 in 0 : vector<1x16x8xf32>, vector<1x16x8xf32>, vector<1x16x8xf32>, vector<1x16x8xf32> -> vector<4x16x8xf32>
    %25 = vector.extract_strided_slice %15 {offsets = [0, 32], sizes = [16, 8], strides = [1, 1]} : vector<16x128xf32> to vector<16x8xf32>
    %26 = vector.extract_strided_slice %15 {offsets = [0, 40], sizes = [16, 8], strides = [1, 1]} : vector<16x128xf32> to vector<16x8xf32>
    %27 = vector.extract_strided_slice %15 {offsets = [0, 48], sizes = [16, 8], strides = [1, 1]} : vector<16x128xf32> to vector<16x8xf32>
    %28 = vector.extract_strided_slice %15 {offsets = [0, 56], sizes = [16, 8], strides = [1, 1]} : vector<16x128xf32> to vector<16x8xf32>
    %29 = vector.shape_cast %25 : vector<16x8xf32> to vector<1x16x8xf32>
    %30 = vector.shape_cast %26 : vector<16x8xf32> to vector<1x16x8xf32>
    %31 = vector.shape_cast %27 : vector<16x8xf32> to vector<1x16x8xf32>
    %32 = vector.shape_cast %28 : vector<16x8xf32> to vector<1x16x8xf32>
    %33 = tpu.concatenate %29, %30, %31, %32 in 0 : vector<1x16x8xf32>, vector<1x16x8xf32>, vector<1x16x8xf32>, vector<1x16x8xf32> -> vector<4x16x8xf32>
    %34 = vector.extract_strided_slice %15 {offsets = [0, 64], sizes = [16, 8], strides = [1, 1]} : vector<16x128xf32> to vector<16x8xf32>
    %35 = vector.extract_strided_slice %15 {offsets = [0, 72], sizes = [16, 8], strides = [1, 1]} : vector<16x128xf32> to vector<16x8xf32>
    %36 = vector.extract_strided_slice %15 {offsets = [0, 80], sizes = [16, 8], strides = [1, 1]} : vector<16x128xf32> to vector<16x8xf32>
    %37 = vector.extract_strided_slice %15 {offsets = [0, 88], sizes = [16, 8], strides = [1, 1]} : vector<16x128xf32> to vector<16x8xf32>
    %38 = vector.shape_cast %34 : vector<16x8xf32> to vector<1x16x8xf32>
    %39 = vector.shape_cast %35 : vector<16x8xf32> to vector<1x16x8xf32>
    %40 = vector.shape_cast %36 : vector<16x8xf32> to vector<1x16x8xf32>
    %41 = vector.shape_cast %37 : vector<16x8xf32> to vector<1x16x8xf32>
    %42 = tpu.concatenate %38, %39, %40, %41 in 0 : vector<1x16x8xf32>, vector<1x16x8xf32>, vector<1x16x8xf32>, vector<1x16x8xf32> -> vector<4x16x8xf32>
    "tpu.trace_start"() <{level = 10 : i32, message = "hrd,hcd->hrc"}> : () -> ()
    %cst_5 = arith.constant dense<0.000000e+00> : vector<4x16x16xf32>
    %43 = tpu.matmul %24, %33, %cst_5 {dimension_numbers = #tpu.dot_dimension_numbers<[2], [2], [1], [1], [0, 0, 0, 1, 1, 1], [0], [0]>} : vector<4x16x8xf32>, vector<4x16x8xf32>, vector<4x16x16xf32> -> vector<4x16x16xf32>
    "tpu.trace_stop"() : () -> ()
    %44 = vector.shape_cast %10 : vector<16x16xf32> to vector<1x16x16xf32>
    %45 = vector.broadcast %44 : vector<1x16x16xf32> to vector<4x16x16xf32>
    %46 = arith.addf %43, %45 : vector<4x16x16xf32>
    %cst_6 = arith.constant dense<0xFF800000> : vector<4x16xf32>
    %47 = vector.multi_reduction <maximumf>, %46, %cst_6 [2] : vector<4x16x16xf32> to vector<4x16xf32>
    %48 = vector.shape_cast %47 : vector<4x16xf32> to vector<4x16x1xf32>
    %49 = vector.broadcast %48 : vector<4x16x1xf32> to vector<4x16x16xf32>
    %50 = arith.subf %46, %49 : vector<4x16x16xf32>
    %51 = math.exp %50 : vector<4x16x16xf32>
    %cst_7 = arith.constant dense<0.000000e+00> : vector<4x16xf32>
    %52 = vector.multi_reduction <add>, %51, %cst_7 [2] : vector<4x16x16xf32> to vector<4x16xf32>
    %53 = vector.shape_cast %52 : vector<4x16xf32> to vector<4x16x1xf32>
    %54 = tpu.reciprocal %53 {approx = true} : vector<4x16x1xf32> -> vector<4x16x1xf32>
    "tpu.trace_start"() <{level = 10 : i32, message = "hrc,hcd->hrd"}> : () -> ()
    %cst_8 = arith.constant dense<0.000000e+00> : vector<4x16x8xf32>
    %55 = tpu.matmul %51, %42, %cst_8 {dimension_numbers = #tpu.dot_dimension_numbers<[2], [1], [1], [2], [0, 0, 0, 1, 1, 2], [0], [0]>} : vector<4x16x16xf32>, vector<4x16x8xf32>, vector<4x16x8xf32> -> vector<4x16x8xf32>
    "tpu.trace_stop"() : () -> ()
    %56 = vector.broadcast %54 : vector<4x16x1xf32> to vector<4x16x8xf32>
    %57 = arith.mulf %55, %56 : vector<4x16x8xf32>
    %58 = arith.truncf %57 : vector<4x16x8xf32> to vector<4x16x8xbf16>
    %c0_9 = arith.constant 0 : index
    %c0_10 = arith.constant 0 : index
    %c0_11 = arith.constant 0 : index
    %59 = vector.load %arg2[%c0_9, %c0_10, %c0_11] : memref<4x8x32xbf16, #tpu.memory_space<vmem>>, vector<4x8x32xbf16>
    "tpu.trace_start"() <{level = 10 : i32, message = "hrd,hde->hre"}> : () -> ()
    %cst_12 = arith.constant dense<0.000000e+00> : vector<4x16x32xf32>
    %60 = tpu.matmul %58, %59, %cst_12 {dimension_numbers = #tpu.dot_dimension_numbers<[2], [1], [1], [2], [0, 0, 0, 1, 1, 2], [0], [0]>} : vector<4x16x8xbf16>, vector<4x8x32xbf16>, vector<4x16x32xf32> -> vector<4x16x32xf32>
    "tpu.trace_stop"() : () -> ()
    %cst_13 = arith.constant dense<0.000000e+00> : vector<16x32xf32>
    %61 = vector.multi_reduction <add>, %60, %cst_13 [0] : vector<4x16x32xf32> to vector<16x32xf32>
    %62 = vector.broadcast %3 : vector<1x32xf32> to vector<16x32xf32>
    %63 = arith.addf %61, %62 : vector<16x32xf32>
    %64 = arith.addf %0, %63 : vector<16x32xf32>
    %cst_14 = arith.constant dense<0.000000e+00> : vector<16xf32>
    %65 = vector.multi_reduction <add>, %64, %cst_14 [1] : vector<16x32xf32> to vector<16xf32>
    %66 = vector.shape_cast %65 : vector<16xf32> to vector<16x1xf32>
    %cst_15 = arith.constant 3.200000e+01 : f32
    %67 = vector.broadcast %cst_15 : f32 to vector<16x1xf32>
    %68 = arith.divf %66, %67 : vector<16x1xf32>
    %69 = vector.broadcast %68 : vector<16x1xf32> to vector<16x32xf32>
    %70 = arith.subf %64, %69 : vector<16x32xf32>
    %71 = arith.mulf %70, %70 : vector<16x32xf32>
    %cst_16 = arith.constant dense<0.000000e+00> : vector<16xf32>
    %72 = vector.multi_reduction <add>, %71, %cst_16 [1] : vector<16x32xf32> to vector<16xf32>
    %73 = vector.shape_cast %72 : vector<16xf32> to vector<16x1xf32>
    %cst_17 = arith.constant 3.200000e+01 : f32
    %74 = vector.broadcast %cst_17 : f32 to vector<16x1xf32>
    %75 = arith.divf %73, %74 : vector<16x1xf32>
    %76 = vector.broadcast %68 : vector<16x1xf32> to vector<16x32xf32>
    %77 = arith.subf %64, %76 : vector<16x32xf32>
    %cst_18 = arith.constant 9.99999974E-6 : f32
    %78 = vector.broadcast %cst_18 : f32 to vector<16x1xf32>
    %79 = arith.addf %75, %78 : vector<16x1xf32>
    %80 = math.rsqrt %79 : vector<16x1xf32>
    %81 = vector.broadcast %80 : vector<16x1xf32> to vector<16x32xf32>
    %82 = arith.mulf %77, %81 : vector<16x32xf32>
    %83 = vector.broadcast %6 : vector<1x32xf32> to vector<16x32xf32>
    %84 = arith.mulf %82, %83 : vector<16x32xf32>
    %85 = vector.broadcast %7 : vector<1x32xf32> to vector<16x32xf32>
    %86 = arith.addf %84, %85 : vector<16x32xf32>
    %87 = arith.truncf %86 : vector<16x32xf32> to vector<16x32xbf16>
    %c32 = arith.constant 32 : index
    %c0_19 = arith.constant 0 : index
    %88 = vector.load %arg1[%c32, %c0_19] : memref<96x128xbf16, #tpu.memory_space<vmem>>, vector<32x64xbf16>
    %cst_20 = arith.constant dense<0.000000e+00> : vector<16x64xf32>
    %89 = tpu.matmul %87, %88, %cst_20 {dimension_numbers = #tpu.dot_dimension_numbers<[1], [0], [0], [1], [0, 0, 1, 1], [], []>} : vector<16x32xbf16>, vector<32x64xbf16>, vector<16x64xf32> -> vector<16x64xf32>
    %90 = vector.broadcast %4 : vector<1x64xf32> to vector<16x64xf32>
    %91 = arith.addf %89, %90 : vector<16x64xf32>
    %cst_21 = arith.constant 0.000000e+00 : f32
    %92 = vector.broadcast %cst_21 : f32 to vector<16x64xf32>
    %93 = arith.maximumf %91, %92 : vector<16x64xf32>
    %94 = arith.truncf %93 : vector<16x64xf32> to vector<16x64xbf16>
    %c32_22 = arith.constant 32 : index
    %c64 = arith.constant 64 : index
    %95 = vector.load %arg1[%c32_22, %c64] : memref<96x128xbf16, #tpu.memory_space<vmem>>, vector<64x32xbf16>
    %cst_23 = arith.constant dense<0.000000e+00> : vector<16x32xf32>
    %96 = tpu.matmul %94, %95, %cst_23 {dimension_numbers = #tpu.dot_dimension_numbers<[1], [0], [0], [1], [0, 0, 1, 1], [], []>} : vector<16x64xbf16>, vector<64x32xbf16>, vector<16x32xf32> -> vector<16x32xf32>
    %97 = vector.broadcast %5 : vector<1x32xf32> to vector<16x32xf32>
    %98 = arith.addf %96, %97 : vector<16x32xf32>
    %99 = arith.addf %86, %98 : vector<16x32xf32>
    %cst_24 = arith.constant dense<0.000000e+00> : vector<16xf32>
    %100 = vector.multi_reduction <add>, %99, %cst_24 [1] : vector<16x32xf32> to vector<16xf32>
    %101 = vector.shape_cast %100 : vector<16xf32> to vector<16x1xf32>
    %cst_25 = arith.constant 3.200000e+01 : f32
    %102 = vector.broadcast %cst_25 : f32 to vector<16x1xf32>
    %103 = arith.divf %101, %102 : vector<16x1xf32>
    %104 = vector.broadcast %103 : vector<16x1xf32> to vector<16x32xf32>
    %105 = arith.subf %99, %104 : vector<16x32xf32>
    %106 = arith.mulf %105, %105 : vector<16x32xf32>
    %cst_26 = arith.constant dense<0.000000e+00> : vector<16xf32>
    %107 = vector.multi_reduction <add>, %106, %cst_26 [1] : vector<16x32xf32> to vector<16xf32>
    %108 = vector.shape_cast %107 : vector<16xf32> to vector<16x1xf32>
    %cst_27 = arith.constant 3.200000e+01 : f32
    %109 = vector.broadcast %cst_27 : f32 to vector<16x1xf32>
    %110 = arith.divf %108, %109 : vector<16x1xf32>
    %111 = vector.broadcast %103 : vector<16x1xf32> to vector<16x32xf32>
    %112 = arith.subf %99, %111 : vector<16x32xf32>
    %cst_28 = arith.constant 9.99999974E-6 : f32
    %113 = vector.broadcast %cst_28 : f32 to vector<16x1xf32>
    %114 = arith.addf %110, %113 : vector<16x1xf32>
    %115 = math.rsqrt %114 : vector<16x1xf32>
    %116 = vector.broadcast %115 : vector<16x1xf32> to vector<16x32xf32>
    %117 = arith.mulf %112, %116 : vector<16x32xf32>
    %118 = vector.broadcast %8 : vector<1x32xf32> to vector<16x32xf32>
    %119 = arith.mulf %117, %118 : vector<16x32xf32>
    %120 = vector.broadcast %9 : vector<1x32xf32> to vector<16x32xf32>
    %121 = arith.addf %119, %120 : vector<16x32xf32>
    %c0_29 = arith.constant 0 : index
    %c0_30 = arith.constant 0 : index
    %122 = vector.load %arg4[%c0_29, %c0_30] : memref<16x32xf32, #tpu.memory_space<vmem>>, vector<16x32xf32>
    tpu.vector_store %arg4[%c0_29, %c0_30], %121 {strides = array<i32>} : memref<16x32xf32, #tpu.memory_space<vmem>>, vector<16x32xf32>,
    return
  }
}

</mosaic_0001>

<bundles_post_ra>
// kernel: tpu_custom_call.1
= control target key start
LH: loop header
LB: loop body
LE: loop exit
PB: predicated region body
PF: predicated region fallthrough
CT: control target
= control target key end

     0   :  { %9 = vsyncpa [#allocation3], 0  ;;  %s2012_s0 = inlined_call_operand.hbm [shape: f32[16,32], index: 0, kind: input, shape index: {}]   ;;  %s2013_s1 = inlined_call_operand.hbm [shape: bf16[96,128], index: 1, kind: input, shape index: {}]   ;;  %s2014_s2 = inlined_call_operand.hbm [shape: bf16[4,8,32], index: 2, kind: input, shape index: {}]   ;;  %s2015_s3 = inlined_call_operand.hbm [shape: f32[24,128], index: 3, kind: input, shape index: {}]   ;;  %s2016_s4 = inlined_call_operand.hbm [shape: f32[16,32], index: 4, kind: output, shape index: {}]  }
   0x1   :  { %10 = vsyncpa [#allocation6], 0 }
   0x2   :  { %11 = vsyncpa [#allocation9], 0 }
   0x3   :  { %12 = vsyncpa [#allocation4], 0  ;;  %s1790_s15 = smov [#allocation5]  }
   0x4   :  { %s30_s16 = sshll.u32 %s1790_s15, 4  ;;  %s31_s16 = int_to_ptr.vmem [resolvable:$true] %s30_s16 }
   0x5   :  { %s1690_s17 = scalar_lea.vmem %s31_s16, 768  ;;  %p1695_p1 = scmp.lt.s32.totalorder %s31_s16, %s31_s16 }
   0x6   :  { %p1691_p0 = scmp.ne.s32.totalorder %s31_s16, %s1690_s17  ;;  %p1696_p2 = scmp.lt.s32.totalorder %s1690_s17, %s1690_s17 }
   0x8   :  { %p1697_p3 = por %p1696_p2, %p1695_p1 }
   0xa   :  { %p1698_p4 = pnand %p1697_p3, %p1691_p0 }
   0xc   :  { %1701 = shalt.err (!%p1698_p4)
}
   0xd   :  { %s1791_s18 = smov 64   ;;  %s1792_s19 = smov 4  }
   0xe   :  { %36 = dma.hbm_to_vmem [thread:$0]  %s2013_s1, 768, %s31_s16, [#allocation6], %s1791_s18, %s1791_s18, %s1792_s19  }
   0xf   :  { %s1793_s22 = smov [#allocation2]  }
  0x10   :  { %s18_s23 = sshll.u32 %s1793_s22, 4  ;;  %s19_s23 = int_to_ptr.vmem [resolvable:$true] %s18_s23 }
  0x11   :  { %s1710_s24 = scalar_lea.vmem %s19_s23, 256  ;;  %p1715_p6 = scmp.lt.s32.totalorder %s19_s23, %s19_s23 }
  0x12   :  { %p1711_p5 = scmp.ne.s32.totalorder %s19_s23, %s1710_s24  ;;  %p1716_p7 = scmp.lt.s32.totalorder %s1710_s24, %s1710_s24 }
  0x14   :  { %p1717_p8 = por %p1716_p7, %p1715_p6 }
  0x16   :  { %p1718_p9 = pnand %p1717_p8, %p1711_p5 }
  0x18   :  { %1721 = shalt.err (!%p1718_p9)
}
  0x19   :  { %s1794_s25 = smov 128   ;;  %s1795_s26 = smov 8  }
  0x1a   :  { %24 = dma.hbm_to_vmem [thread:$0]  %s2012_s0, 256, %s19_s23, [#allocation3], %s1794_s25, %s1794_s25, %s1795_s26  }
  0x1b   :  { %s1796_s1 = smov [#allocation7]   ;;  %s1797_s30 = smov [#allocation8]  }
  0x1c   :  { %s42_s29 = sshll.u32 %s1796_s1, 4  ;;  %s54_s5 = sshll.u32 %s1797_s30, 4  ;;  %s43_s29 = int_to_ptr.vmem [resolvable:$true] %s42_s29  ;;  %s55_s5 = int_to_ptr.vmem [resolvable:$true] %s54_s5 }
  0x1d   :  { %s1730_s6 = scalar_lea.vmem %s43_s29, 256  ;;  %p1735_p11 = scmp.lt.s32.totalorder %s43_s29, %s43_s29 }
  0x1e   :  { %p1731_p10 = scmp.ne.s32.totalorder %s43_s29, %s1730_s6  ;;  %p1736_p12 = scmp.lt.s32.totalorder %s1730_s6, %s1730_s6 }
  0x20   :  { %p1737_p13 = por %p1736_p12, %p1735_p11 }
  0x22   :  { %p1738_p0 = pnand %p1737_p13, %p1731_p10 }
  0x24   :  { %1741 = shalt.err (!%p1738_p0)
}
  0x25   :  { %48 = dma.hbm_to_vmem [thread:$0]  %s2014_s2, 256, %s43_s29, [#allocation6], %s1791_s18, %s1791_s18, %s1792_s19  }
  0x26   :  { %s1750_s0 = scalar_lea.vmem %s55_s5, 384  ;;  %p1755_p2 = scmp.lt.s32.totalorder %s55_s5, %s55_s5 }
  0x27   :  { %p1751_p1 = scmp.ne.s32.totalorder %s55_s5, %s1750_s0  ;;  %p1756_p3 = scmp.lt.s32.totalorder %s1750_s0, %s1750_s0 }
  0x29   :  { %p1757_p4 = por %p1756_p3, %p1755_p2 }
  0x2b   :  { %p1758_p5 = pnand %p1757_p4, %p1751_p1 }
  0x2d   :  { %1761 = shalt.err (!%p1758_p5)
}
  0x2e   :  { %60 = dma.hbm_to_vmem [thread:$0]  %s2015_s3, 384, %s55_s5, [#allocation9], %s1794_s25, %s1794_s25, %s1795_s26  }
  0x2f   :  { %1782 = dma.done.wait [#allocation3], 256  }
  0x30   :  { %1783 = vsyncadd [#allocation3], 4294967040 }
  0x31   :  { %1784 = dma.done.wait [#allocation6], 1024  }
  0x32   :  { %1785 = vsyncadd [#allocation6], 4294966272 }
  0x33   :  { %1786 = dma.done.wait [#allocation9], 384  }
  0x34   :  { %1787 = vsyncadd [#allocation9], 4294966912  ;;  %v1798_v0 = vmov 0.0   ;;  %vm1799_vm0 = vmmov 0   ;;  %v1634_v1 = vld [vmem:[#allocation5 + $0x8] sm:$0xff]   ;;  %v1635_v2 = vld [vmem:[#allocation5] sm:$0xff]   ;;  %v84_v6 = vlaneseq }
  0x35   :  { %1511 = vmatprep.subr.bf16.mxu0 %v1798_v0  ;;  %1515 = vmatprep.mubr.msk.bf16.mxu0 %vm1799_vm0, %v1798_v0  ;;  %v1857_v3 = vld [vmem:[#allocation2] sm:$0xff]  ;;  %v1859_v4 = vld [vmem:[#allocation2 + $0x8] sm:$0xff]  ;;  %vm100_vm1 = vcmask 261120   ;;  %v1868_v9 = vld [vmem:[#allocation8] sm:$0xff]  ;;  %vm163_vm2 = vcmask 64512   ;;  %s1800_s2 = smov 112  }
  0x36   :  { %1512 = vmatpush3.bf16.msra.mxu0 %v1634_v1  ;;  %v79_v5 = vpack.c.bf16 %v1859_v4, %v1857_v3  ;;  %v1865_v7 = vshrl.u32 %v84_v6, 7  ;;  %s1801_s3 = smov 120   ;;  %s1802_s11 = smov 104   ;;  %v78_v37 = vld [vmem:[#allocation8 + $0x10] sm:$0xff]  ;;  %v77_v39 = vld [vmem:[#allocation8 + $0x8] sm:$0xff]  ;;  %vm508_vm3 = vcmask 130048  }
  0x37   :  { %1513 = vmatprep.subr.bf16.mxu0 %v1798_v0  ;;  %s1803_s12 = smov 96   ;;  %vm956_vm4 = vcmask 1043456   ;;  %vm1315_vm5 = vcmask 523264   ;;  %s1804_s13 = smov [#allocation10]  }
  0x38   :  { %v86_v8 = vsub.s32 0, %v1865_v7  ;;  %s1407_s14 = sshll.u32 %s1804_s13, 4  ;;  %s1408_s14 = int_to_ptr.vmem [resolvable:$true] %s1407_s14 }
  0x39   :  { %s1762_s15 = scalar_lea.vmem %s1408_s14, 256  ;;  %p1767_p7 = scmp.lt.s32.totalorder %s1408_s14, %s1408_s14 }
  0x3a   :  { %1514 = vmatpush3.bf16.msra.mxu0 %v1635_v2  ;;  %v87_v10 = vrot.slane %v1868_v9, %v86_v8  ;;  %p1763_p6 = scmp.ne.s32.totalorder %s1408_s14, %s1762_s15  ;;  %p1768_p8 = scmp.lt.s32.totalorder %s1762_s15, %s1762_s15 }
  0x3c   :  { %p1769_p9 = por %p1768_p8, %p1767_p7 }
  0x3d   :  { %1516 = vmatmul.mubr.msk.bf16.vlgmr.msra.gmra.mxu0 %vm100_vm1, %v79_v5 }
  0x3e   :  { %p1770_p10 = pnand %p1769_p9, %p1763_p6 }
  0xfd   :  { %v138_v11 = vpop.f32.mrf.mxu0 }
  0xfe   :  { %v139_v12 = vadd.f32 %v138_v11, %v87_v10 }
  0xff   :  { %v1517_v13 = vpop.f32.mrf.mxu0 }
 0x100   :  { %1523 = vmatprep.mubr.msk.f32.mxu1 %vm163_vm2, %v139_v12 }
 0x101   :  { %v141_v14 = vpop.f32.mrf.mxu0 }
 0x102   :  { %v142_v15 = vadd.f32 %v141_v14, %v87_v10 }
 0x103   :  { %v1518_v16 = vpop.f32.mrf.mxu0 }
 0x104   :  { %153 = vrot.lane.b32.xlu1 %v142_v15, %s1800_s2  ;;  %149 = vrot.lane.b32.xlu0 %v142_v15, %s1801_s3 }
 0x108   :  { %157 = vrot.lane.b32.xlu1 %v142_v15, %s1802_s11  ;;  %147 = vrot.lane.b32.xlu0 %v139_v12, %s1801_s3 }
 0x10c   :  { %155 = vrot.lane.b32.xlu1 %v139_v12, %s1802_s11  ;;  %151 = vrot.lane.b32.xlu0 %v139_v12, %s1800_s2 }
 0x110   :  { %161 = vrot.lane.b32.xlu0 %v142_v15, %s1803_s12 }
 0x114   :  { %159 = vrot.lane.b32.xlu0 %v139_v12, %s1803_s12 }
 0x176   :  { %v154_v17 = vpop.permute.xlu1 %153  ;;  %v150_v18 = vpop.permute.xlu0 %149 }
 0x177   :  { %336 = vrot.lane.b32.xlu0 %v154_v17, %s1803_s12  ;;  %249 = vrot.lane.b32.xlu1 %v150_v18, %s1803_s12 }
 0x17a   :  { %v148_v19 = vpop.permute.xlu0 %147  ;;  %v1873_v20 = vpop.permute.xlu1 %157 }
 0x17b   :  { %1530 = vmatprep.mubr.msk.f32.mxu0 %vm163_vm2, %v148_v19  ;;  %247 = vrot.lane.b32.xlu1 %v148_v19, %s1803_s12 }
 0x17e   :  { %v152_v21 = vpop.permute.xlu0 %151  ;;  %v1876_v22 = vpop.permute.xlu1 %155 }
 0x17f   :  { %423 = vrot.lane.b32.xlu1 %v1873_v20, %s1803_s12  ;;  %334 = vrot.lane.b32.xlu0 %v152_v21, %s1803_s12 }
 0x182   :  { %v162_v23 = vpop.permute.xlu0 %161 }
 0x183   :  { %421 = vrot.lane.b32.xlu1 %v1876_v22, %s1803_s12  ;;  %589 = vrot.lane.b32.xlu0 %v139_v12, %s1791_s18 }
 0x184   :  { %1519 = vmatprep.subr.msk.mxu1 %vm163_vm2, %v162_v23 }
 0x185   :  { %1520 = vmatpush3.xpose.msk.msra.mxu1 %vm163_vm2, %v162_v23 }
 0x186   :  { %v160_v24 = vpop.permute.xlu0 %159 }
 0x187   :  { %591 = vrot.lane.b32.xlu1 %v142_v15, %s1791_s18  ;;  %765 = vrot.lane.b32.xlu0 %v154_v17, %s1791_s18 }
 0x188   :  { %1521 = vmatprep.subr.msk.mxu1 %vm163_vm2, %v160_v24 }
 0x189   :  { %1522 = vmatpush3.xpose.msk.msra.mxu1 %vm163_vm2, %v160_v24 }
 0x18b   :  { %676 = vrot.lane.b32.xlu1 %v148_v19, %s1791_s18 }
 0x18c   :  { %1524 = vmatmul.mubr.msk.f32.vlgmr.msra.gmra.mxu1 %vm163_vm2, %v142_v15 }
 0x18d   :  { %1537 = vmatprep.mubr.msk.f32.mxu1 %vm163_vm2, %v152_v21 }
 0x18f   :  { %763 = vrot.lane.b32.xlu1 %v152_v21, %s1791_s18 }
 0x193   :  { %678 = vrot.lane.b32.xlu1 %v150_v18, %s1791_s18 }
 0x1e9   :  { %v250_v25 = vpop.permute.xlu1 %249  ;;  %v337_v26 = vpop.permute.xlu0 %336 }
 0x1ea   :  { %1526 = vmatprep.subr.msk.mxu0 %vm163_vm2, %v250_v25  ;;  %1533 = vmatprep.subr.msk.mxu1 %vm163_vm2, %v337_v26 }
 0x1eb   :  { %1527 = vmatpush3.xpose.msk.msra.mxu0 %vm163_vm2, %v250_v25  ;;  %1534 = vmatpush3.xpose.msk.msra.mxu1 %vm163_vm2, %v337_v26 }
 0x1ed   :  { %v248_v27 = vpop.permute.xlu1 %247 }
 0x1ee   :  { %1528 = vmatprep.subr.msk.mxu0 %vm163_vm2, %v248_v27 }
 0x1ef   :  { %1529 = vmatpush3.xpose.msk.msra.mxu0 %vm163_vm2, %v248_v27 }
 0x1f1   :  { %v424_v28 = vpop.permute.xlu1 %423  ;;  %v335_v29 = vpop.permute.xlu0 %334 }
 0x1f2   :  { %1531 = vmatmul.mubr.msk.f32.vlgmr.msra.gmra.mxu0 %vm163_vm2, %v150_v18  ;;  %1535 = vmatprep.subr.msk.mxu1 %vm163_vm2, %v335_v29 }
 0x1f3   :  { %1540 = vmatprep.subr.msk.mxu0 %vm163_vm2, %v424_v28  ;;  %1536 = vmatpush3.xpose.msk.msra.mxu1 %vm163_vm2, %v335_v29 }
 0x1f4   :  { %1541 = vmatpush3.xpose.msk.msra.mxu0 %vm163_vm2, %v424_v28  ;;  %1544 = vmatprep.mubr.msk.f32.mxu0 %vm163_vm2, %v1876_v22 }
 0x1f5   :  { %v422_v30 = vpop.permute.xlu1 %421  ;;  %v590_v31 = vpop.permute.xlu0 %589 }
 0x1f6   :  { %1538 = vmatmul.mubr.msk.f32.vlgmr.msra.gmra.mxu1 %vm163_vm2, %v154_v17  ;;  %1542 = vmatprep.subr.msk.mxu0 %vm163_vm2, %v422_v30 }
 0x1f8   :  { %1543 = vmatpush3.xpose.msk.msra.mxu0 %vm163_vm2, %v422_v30 }
 0x1f9   :  { %v592_v32 = vpop.permute.xlu1 %591  ;;  %v766_v34 = vpop.permute.xlu0 %765 }
 0x1fa   :  { %1547 = vmatprep.subr.mxu0 %v592_v32 }
 0x1fb   :  { %1545 = vmatmul.mubr.msk.f32.vlgmr.msra.gmra.mxu0 %vm163_vm2, %v1873_v20 }
 0x1fc   :  { %1548 = vmatpush3.msra.mxu0 %v592_v32 }
 0x1fd   :  { %1549 = vmatprep.subr.mxu0 %v590_v31  ;;  %v677_v33 = vpop.permute.xlu1 %676 }
 0x1fe   :  { %1550 = vmatpush3.msra.mxu0 %v590_v31 }
 0x1ff   :  { %1561 = vmatprep.subr.mxu0 %v766_v34 }
 0x201   :  { %v764_v35 = vpop.permute.xlu1 %763 }
 0x205   :  { %v679_v36 = vpop.permute.xlu1 %678 }
 0x206   :  { %1554 = vmatprep.subr.mxu1 %v679_v36 }
 0x207   :  { %1555 = vmatpush3.msra.mxu1 %v679_v36 }
 0x208   :  { %1556 = vmatprep.subr.mxu1 %v677_v33 }
 0x209   :  { %1557 = vmatpush3.msra.mxu1 %v677_v33 }
 0x24c   :  { %v1525_v38 = vpop.f32.mrf.mxu1 }
 0x24d   :  { %v244_v40 = vadd.f32 %v1525_v38, %v78_v37 }
 0x24e   :  { %v238_v41 = vpop.f32.mrf.mxu1 }
 0x24f   :  { %v239_v42 = vadd.f32 %v238_v41, %v77_v39  ;;  %v512_v43 = vsel %vm508_vm3, %v244_v40, -inf }
 0x250   :  { %513 = vmax.xlane.f32.xlu1 %v512_v43 }
 0x251   :  { %v509_v44 = vsel %vm508_vm3, %v239_v42, -inf }
 0x252   :  { %510 = vmax.xlane.f32.xlu0 %v509_v44 }
 0x2b2   :  { %v1532_v45 = vpop.f32.mrf.mxu0 }
 0x2b3   :  { %v331_v46 = vadd.f32 %v1532_v45, %v78_v37 }
 0x2b4   :  { %v325_v48 = vpop.f32.mrf.mxu0 }
 0x2b5   :  { %v518_v47 = vsel %vm508_vm3, %v331_v46, -inf  ;;  %v326_v52 = vadd.f32 %v325_v48, %v77_v39  ;;  %v950_v48 = vld [vmem:[#allocation7 + $0x4] sm:$0xf] }
 0x2b6   :  { %v1539_v49 = vpop.f32.mrf.mxu1  ;;  %519 = vmax.xlane.f32.xlu0 %v518_v47 }
 0x2b7   :  { %v418_v50 = vadd.f32 %v1539_v49, %v78_v37  ;;  %v515_v59 = vsel %vm508_vm3, %v326_v52, -inf }
 0x2b8   :  { %v412_v51 = vpop.f32.mrf.mxu1 }
 0x2b9   :  { %v413_v53 = vadd.f32 %v412_v51, %v77_v39  ;;  %v524_v54 = vsel %vm508_vm3, %v418_v50, -inf }
 0x2ba   :  { %525 = vmax.xlane.f32.xlu0 %v524_v54 }
 0x2bb   :  { %v1546_v55 = vpop.f32.mrf.mxu0  ;;  %v521_v56 = vsel %vm508_vm3, %v413_v53, -inf }
 0x2bc   :  { %522 = vmax.xlane.f32.xlu1 %v521_v56  ;;  %v505_v57 = vadd.f32 %v1546_v55, %v78_v37  ;;  %v951_v56 = vld [vmem:[#allocation7 + $0x8] sm:$0xf] }
 0x2bd   :  { %v499_v58 = vpop.f32.mrf.mxu0 }
 0x2be   :  { %v500_v60 = vadd.f32 %v499_v58, %v77_v39  ;;  %516 = vmax.xlane.f32.xlu0 %v515_v59  ;;  %v530_v62 = vsel %vm508_vm3, %v505_v57, -inf }
 0x2c0   :  { %v527_v61 = vsel %vm508_vm3, %v500_v60, -inf }
 0x2c1   :  { %528 = vmax.xlane.f32.xlu1 %v527_v61 }
 0x2c2   :  { %531 = vmax.xlane.f32.xlu0 %v530_v62 }
 0x2d2   :  { %850 = vrot.lane.b32.xlu1 %v1876_v22, %s1791_s18 }
 0x2d8   :  { %852 = vrot.lane.b32.xlu0 %v1873_v20, %s1791_s18 }
 0x2d9   :  { %v514_v63 = vpop.xlane.xlu1 %513 }
 0x2da   :  { %v534_v1 = vsub.f32 %v244_v40, %v514_v63 }
 0x2db   :  { %v511_v2 = vpop.xlane.xlu0 %510 }
 0x2dc   :  { %v533_v5 = vsub.f32 %v239_v42, %v511_v2  ;;  %v543_v6 = vmul.f32 1.442695, %v534_v1 }
 0x2de   :  { %v541_v8 = vmul.f32 1.442695, %v533_v5 }
 0x2e0   :  { %1642 = vpow2.f32 %v541_v8 }
 0x2e1   :  { %1644 = vpow2.f32 %v543_v6 }
 0x2ed   :  { %v1643_v10 = vpop.eup %1642 }
 0x2ee   :  { %v1645_v11 = vpop.eup %1644  ;;  %1551 = vmatprep.mubr.msk.f32.mxu0 %vm508_vm3, %v1643_v10  ;;  %v557_v13 = vsel %vm508_vm3, %v1643_v10, 0.0 }
 0x2ef   :  { %1552 = vmatmul.mubr.msk.f32.vlgmr.msra.gmra.mxu0 %vm508_vm3, %v1645_v11  ;;  %v560_v12 = vsel %vm508_vm3, %v1645_v11, 0.0 }
 0x2f0   :  { %1562 = vmatpush3.msra.mxu0 %v766_v34 }
 0x2f1   :  { %1563 = vmatprep.subr.mxu0 %v764_v35 }
 0x2f2   :  { %1564 = vmatpush3.msra.mxu0 %v764_v35  ;;  %v949_v35 = vld [vmem:[#allocation7] sm:$0xf] }
 0x2f3   :  { %1575 = vmatprep.subr.bf16.mxu0 %v1798_v0  ;;  %v958_v37 = vsel %vm956_vm4, %v949_v35, 0 }
 0x2f6   :  { %561 = vadd.xlane.f32.xlu1 %v560_v12 }
 0x2f7   :  { %558 = vadd.xlane.f32.xlu0 %v557_v13 }
 0x33f   :  { %v520_v14 = vpop.xlane.xlu0 %519 }
 0x340   :  { %v536_v15 = vsub.f32 %v331_v46, %v520_v14 }
 0x342   :  { %v547_v16 = vmul.f32 1.442695, %v536_v15 }
 0x343   :  { %v526_v17 = vpop.xlane.xlu0 %525 }
 0x344   :  { %1646 = vpow2.f32 %v547_v16  ;;  %v538_v18 = vsub.f32 %v418_v50, %v526_v17  ;;  %v1005_v50 = vsel %vm956_vm4, %v950_v48, 0 }
 0x345   :  { %v523_v19 = vpop.xlane.xlu1 %522 }
 0x346   :  { %v537_v20 = vsub.f32 %v413_v53, %v523_v19  ;;  %v551_v21 = vmul.f32 1.442695, %v538_v18  ;;  %v952_v18 = vld [vmem:[#allocation7 + $0xc] sm:$0xf] }
 0x347   :  { %v517_v22 = vpop.xlane.xlu0 %516 }
 0x348   :  { %v549_v23 = vmul.f32 1.442695, %v537_v20  ;;  %v535_v24 = vsub.f32 %v326_v52, %v517_v22 }
 0x34a   :  { %1648 = vpow2.f32 %v549_v23  ;;  %v545_v25 = vmul.f32 1.442695, %v535_v24  ;;  %v529_v26 = vpop.xlane.xlu1 %528  ;;  %v1099_v24 = vsel %vm956_vm4, %v952_v18, 0 }
 0x34b   :  { %1650 = vpow2.f32 %v551_v21  ;;  %v539_v27 = vsub.f32 %v500_v60, %v529_v26  ;;  %v532_v28 = vpop.xlane.xlu0 %531  ;;  %v1052_v60 = vsel %vm956_vm4, %v951_v56, 0 }
 0x34c   :  { %1652 = vpow2.f32 %v545_v25  ;;  %v540_v29 = vsub.f32 %v505_v57, %v532_v28 }
 0x34d   :  { %v553_v30 = vmul.f32 1.442695, %v539_v27 }
 0x34e   :  { %v555_v31 = vmul.f32 1.442695, %v540_v29  ;;  %v851_v43 = vpop.permute.xlu1 %850 }
 0x34f   :  { %1654 = vpow2.f32 %v553_v30  ;;  %v853_v32 = vpop.permute.xlu0 %852 }
 0x350   :  { %1656 = vpow2.f32 %v555_v31  ;;  %1568 = vmatprep.subr.mxu1 %v853_v32 }
 0x351   :  { %v1647_v33 = vpop.eup %1646 }
 0x352   :  { %v566_v34 = vsel %vm508_vm3, %v1647_v33, 0.0 }
 0x353   :  { %567 = vadd.xlane.f32.xlu0 %v566_v34 }
 0x357   :  { %v1649_v36 = vpop.eup %1648 }
 0x358   :  { %v1651_v38 = vpop.eup %1650  ;;  %1565 = vmatprep.mubr.msk.f32.mxu0 %vm508_vm3, %v1649_v36  ;;  %v569_v39 = vsel %vm508_vm3, %v1649_v36, 0.0 }
 0x359   :  { %v1653_v40 = vpop.eup %1652  ;;  %1566 = vmatmul.mubr.msk.f32.vlgmr.msra.gmra.mxu0 %vm508_vm3, %v1651_v38  ;;  %570 = vadd.xlane.f32.xlu1 %v569_v39  ;;  %v572_v46 = vsel %vm508_vm3, %v1651_v38, 0.0 }
 0x35a   :  { %1558 = vmatprep.mubr.msk.f32.mxu1 %vm508_vm3, %v1653_v40  ;;  %v563_v41 = vsel %vm508_vm3, %v1653_v40, 0.0  ;;  %1576 = vmatpush3.bf16.msra.mxu0 %v958_v37 }
 0x35b   :  { %1559 = vmatmul.mubr.msk.f32.vlgmr.msra.gmra.mxu1 %vm508_vm3, %v1647_v33  ;;  %564 = vadd.xlane.f32.xlu0 %v563_v41 }
 0x35c   :  { %v1655_v42 = vpop.eup %1654  ;;  %1569 = vmatpush3.msra.mxu1 %v853_v32  ;;  %1577 = vmatprep.mubr.msk.bf16.mxu0 %vm1799_vm0, %v1798_v0 }
 0x35d   :  { %v1657_v44 = vpop.eup %1656  ;;  %1570 = vmatprep.subr.mxu1 %v851_v43  ;;  %1572 = vmatprep.mubr.msk.f32.mxu1 %vm508_vm3, %v1655_v42  ;;  %v575_v45 = vsel %vm508_vm3, %v1655_v42, 0.0 }
 0x35e   :  { %576 = vadd.xlane.f32.xlu1 %v575_v45  ;;  %1571 = vmatpush3.msra.mxu1 %v851_v43  ;;  %v578_v47 = vsel %vm508_vm3, %v1657_v44, 0.0  ;;  %v1158_v45 = vsub.s32 1, %v1865_v7 }
 0x35f   :  { %573 = vadd.xlane.f32.xlu0 %v572_v46  ;;  %1573 = vmatmul.mubr.msk.f32.vlgmr.msra.gmra.mxu1 %vm508_vm3, %v1657_v44 }
 0x360   :  { %1587 = vmatprep.subr.bf16.mxu0 %v1798_v0  ;;  %1581 = vmatprep.subr.bf16.mxu1 %v1798_v0 }
 0x361   :  { %1583 = vmatprep.mubr.msk.bf16.mxu1 %vm1799_vm0, %v1798_v0  ;;  %1582 = vmatpush3.bf16.msra.mxu1 %v1005_v50 }
 0x362   :  { %1593 = vmatprep.subr.bf16.mxu1 %v1798_v0 }
 0x363   :  { %579 = vadd.xlane.f32.xlu0 %v578_v47 }
 0x37f   :  { %v562_v49 = vpop.xlane.xlu1 %561 }
 0x380   :  { %v559_v51 = vpop.xlane.xlu0 %558  ;;  %1658 = vrcp.f32 %v562_v49 }
 0x381   :  { %1660 = vrcp.f32 %v559_v51 }
 0x38d   :  { %v1659_v53 = vpop.eup %1658 }
 0x38e   :  { %v1661_v54 = vpop.eup %1660 }
 0x3af   :  { %v1553_v52 = vpop.f32.mrf.mxu0 }
 0x3b0   :  { %v938_v57 = vmul.f32 %v1659_v53, %v1553_v52  ;;  %v1159_v53 = vrot.slane %v1868_v9, %v1158_v45 }
 0x3b1   :  { %v667_v55 = vpop.f32.mrf.mxu0 }
 0x3b2   :  { %v937_v58 = vmul.f32 %v1661_v54, %v667_v55 }
 0x3b4   :  { %v945_v59 = vpack.c.bf16 %v938_v57, %v937_v58 }
 0x3b6   :  { %1578 = vmatmul.mubr.msk.bf16.vlgmr.msra.gmra.mxu0 %vm163_vm2, %v945_v59 }
 0x3b7   :  { %1588 = vmatpush3.bf16.msra.mxu0 %v1052_v60  ;;  %1589 = vmatprep.mubr.msk.bf16.mxu0 %vm1799_vm0, %v1798_v0 }
 0x3b8   :  { %1599 = vmatprep.subr.bf16.mxu0 %v1798_v0 }
 0x3dc   :  { %v568_v61 = vpop.xlane.xlu0 %567 }
 0x3e2   :  { %v571_v63 = vpop.xlane.xlu1 %570 }
 0x3e3   :  { %1662 = vrcp.f32 %v571_v63 }
 0x3e4   :  { %v565_v62 = vpop.xlane.xlu0 %564 }
 0x3e7   :  { %v577_v2 = vpop.xlane.xlu1 %576 }
 0x3e8   :  { %v574_v1 = vpop.xlane.xlu0 %573 }
 0x3e9   :  { %1664 = vrcp.f32 %v574_v1 }
 0x3ea   :  { %1666 = vrcp.f32 %v568_v61 }
 0x3eb   :  { %1668 = vrcp.f32 %v565_v62 }
 0x3ec   :  { %v580_v5 = vpop.xlane.xlu0 %579  ;;  %1670 = vrcp.f32 %v577_v2 }
 0x3ed   :  { %1672 = vrcp.f32 %v580_v5 }
 0x3f0   :  { %v1663_v8 = vpop.eup %1662 }
 0x3f6   :  { %v1665_v10 = vpop.eup %1664 }
 0x3f7   :  { %v1667_v13 = vpop.eup %1666 }
 0x3f8   :  { %v1669_v16 = vpop.eup %1668 }
 0x3f9   :  { %v1671_v26 = vpop.eup %1670 }
 0x3fa   :  { %v1673_v28 = vpop.eup %1672 }
 0x419   :  { %v1567_v6 = vpop.f32.mrf.mxu0 }
 0x41a   :  { %v942_v14 = vmul.f32 %v1665_v10, %v1567_v6 }
 0x41b   :  { %v1560_v11 = vpop.f32.mrf.mxu1  ;;  %v841_v12 = vpop.f32.mrf.mxu0 }
 0x41c   :  { %v941_v15 = vmul.f32 %v1663_v8, %v841_v12  ;;  %v940_v19 = vmul.f32 %v1667_v13, %v1560_v11 }
 0x41d   :  { %v754_v17 = vpop.f32.mrf.mxu1 }
 0x41e   :  { %v947_v20 = vpack.c.bf16 %v942_v14, %v941_v15  ;;  %v939_v21 = vmul.f32 %v1669_v16, %v754_v17 }
 0x41f   :  { %v1574_v22 = vpop.f32.mrf.mxu1 }
 0x420   :  { %v946_v23 = vpack.c.bf16 %v940_v19, %v939_v21  ;;  %1590 = vmatmul.mubr.msk.bf16.vlgmr.msra.gmra.mxu0 %vm163_vm2, %v947_v20  ;;  %v944_v29 = vmul.f32 %v1673_v28, %v1574_v22  ;;  %v1636_v19 = vld [vmem:[#allocation5 + $0x18] sm:$0xff]   ;;  %v1638_v20 = vld [vmem:[#allocation5 + $0x28] sm:$0xff]   ;;  %v1639_v21 = vld [vmem:[#allocation5 + $0x20] sm:$0xff]  }
 0x421   :  { %v928_v25 = vpop.f32.mrf.mxu1  ;;  %1603 = vmatprep.mubr.msk.bf16.mxu0 %vm1799_vm0, %v1798_v0  ;;  %1600 = vmatpush3.bf16.msra.mxu0 %v1636_v19  ;;  %v1640_v22 = vld [vmem:[#allocation5 + $0x18] sm:$0xff]  }
 0x422   :  { %1584 = vmatmul.mubr.msk.bf16.vlgmr.msra.gmra.mxu1 %vm163_vm2, %v946_v23  ;;  %v943_v27 = vmul.f32 %v1671_v26, %v928_v25  ;;  %1601 = vmatprep.subr.bf16.mxu0 %v1798_v0  ;;  %v1641_v23 = vld [vmem:[#allocation5 + $0x10] sm:$0xff]  }
 0x423   :  { %1594 = vmatpush3.bf16.msra.mxu1 %v1099_v24  ;;  %1595 = vmatprep.mubr.msk.bf16.mxu1 %vm1799_vm0, %v1798_v0 }
 0x424   :  { %1607 = vmatprep.subr.bf16.mxu1 %v1798_v0  ;;  %v948_v30 = vpack.c.bf16 %v944_v29, %v943_v27 }
 0x42a   :  { %1596 = vmatmul.mubr.msk.bf16.vlgmr.msra.gmra.mxu1 %vm163_vm2, %v948_v30  ;;  %v1193_v30 = vsub.s32 4, %v1865_v7 }
 0x42b   :  { %1615 = vmatprep.mubr.msk.bf16.mxu1 %vm1799_vm0, %v1798_v0 }
 0x476   :  { %v994_v31 = vpop.f32.mrf.mxu0 }
 0x477   :  { %v1142_v41 = vsel %vm100_vm1, %v994_v31, 0.0 }
 0x478   :  { %v1579_v32 = vpop.f32.mrf.mxu0 }
 0x47a   :  { %v997_v33 = vpop.f32.mrf.mxu0 }
 0x47b   :  { %v1149_v48 = vsel %vm100_vm1, %v997_v33, 0.0  ;;  %v1194_v33 = vrot.slane %v1868_v9, %v1193_v30 }
 0x47c   :  { %v1580_v34 = vpop.f32.mrf.mxu0 }
 0x47d   :  { %v1199_v34 = vsub.s32 5, %v1865_v7 }
 0x4e0   :  { %v1088_v35 = vpop.f32.mrf.mxu0 }
 0x4e1   :  { %v1145_v49 = vsel %vm100_vm1, %v1088_v35, 0.0 }
 0x4e2   :  { %v1041_v36 = vpop.f32.mrf.mxu1  ;;  %v1591_v37 = vpop.f32.mrf.mxu0 }
 0x4e3   :  { %v1143_v38 = vsel %vm100_vm1, %v1041_v36, 0.0 }
 0x4e4   :  { %v1585_v39 = vpop.f32.mrf.mxu1  ;;  %v1091_v40 = vpop.f32.mrf.mxu0  ;;  %v1144_v42 = vadd.f32 %v1143_v38, %v1142_v41 }
 0x4e5   :  { %v1152_v57 = vsel %vm100_vm1, %v1091_v40, 0.0  ;;  %v1200_v40 = vrot.slane %v1868_v9, %v1199_v34 }
 0x4e6   :  { %v1044_v43 = vpop.f32.mrf.mxu1  ;;  %v1592_v44 = vpop.f32.mrf.mxu0  ;;  %v1146_v52 = vadd.f32 %v1145_v49, %v1144_v42 }
 0x4e7   :  { %v1150_v46 = vsel %vm100_vm1, %v1044_v43, 0.0 }
 0x4e8   :  { %v1586_v47 = vpop.f32.mrf.mxu1  ;;  %v1151_v50 = vadd.f32 %v1150_v46, %v1149_v48 }
 0x4e9   :  { %v1210_v47 = vsub.s32 2, %v1865_v7 }
 0x4ea   :  { %v1135_v51 = vpop.f32.mrf.mxu1  ;;  %v1153_v60 = vadd.f32 %v1152_v57, %v1151_v50 }
 0x4eb   :  { %v1147_v54 = vsel %vm100_vm1, %v1135_v51, 0.0  ;;  %v1211_v48 = vrot.slane %v1868_v9, %v1210_v47 }
 0x4ec   :  { %v1148_v55 = vadd.f32 %v1147_v54, %v1146_v52  ;;  %v1597_v56 = vpop.f32.mrf.mxu1 }
 0x4ee   :  { %v1160_v58 = vadd.f32 %v1159_v53, %v1148_v55  ;;  %v1138_v59 = vpop.f32.mrf.mxu1 }
 0x4ef   :  { %v1154_v61 = vsel %vm100_vm1, %v1138_v59, 0.0 }
 0x4f0   :  { %v1155_v62 = vadd.f32 %v1154_v61, %v1153_v60  ;;  %v1598_v63 = vpop.f32.mrf.mxu1  ;;  %v1162_v1 = vadd.f32 %v1160_v58, %v1857_v3  ;;  %v1281_v58 = vsub.s32 3, %v1865_v7 }
 0x4f2   :  { %v1161_v2 = vadd.f32 %v1159_v53, %v1155_v62  ;;  %v1164_v5 = vsel %vm100_vm1, %v1162_v1, 0.0 }
 0x4f3   :  { %1165 = vadd.xlane.f32.xlu1 %v1164_v5 }
 0x4f4   :  { %v1163_v6 = vadd.f32 %v1161_v2, %v1859_v4  ;;  %v1637_v4 = vld [vmem:[#allocation5 + $0x10] sm:$0xff]  }
 0x4f5   :  { %1602 = vmatpush3.bf16.msra.mxu0 %v1637_v4 }
 0x4f6   :  { %v1167_v8 = vsel %vm100_vm1, %v1163_v6, 0.0 }
 0x4f7   :  { %1168 = vadd.xlane.f32.xlu0 %v1167_v8 }
 0x57c   :  { %v1166_v10 = vpop.xlane.xlu1 %1165 }
 0x57d   :  { %v1171_v11 = vmul.f32 0.03125, %v1166_v10 }
 0x57f   :  { %v1173_v12 = vsub.f32 %v1162_v1, %v1171_v11 }
 0x580   :  { %v1169_v13 = vpop.xlane.xlu0 %1168 }
 0x581   :  { %v1172_v14 = vmul.f32 0.03125, %v1169_v13  ;;  %v1175_v15 = vmul.f32 %v1173_v12, %v1173_v12 }
 0x583   :  { %v1174_v16 = vsub.f32 %v1163_v6, %v1172_v14  ;;  %v1177_v17 = vsel %vm100_vm1, %v1175_v15, 0.0 }
 0x584   :  { %1178 = vadd.xlane.f32.xlu1 %v1177_v17 }
 0x585   :  { %v1176_v3 = vmul.f32 %v1174_v16, %v1174_v16 }
 0x587   :  { %v1180_v18 = vsel %vm100_vm1, %v1176_v3, 0.0 }
 0x588   :  { %1181 = vadd.xlane.f32.xlu0 %v1180_v18 }
 0x595   :  { %1309 = vrot.lane.b32.xlu1 %v1638_v20, %s1791_s18 }
 0x599   :  { %1305 = vrot.lane.b32.xlu1 %v1640_v22, %s1791_s18 }
 0x59d   :  { %1303 = vrot.lane.b32.xlu1 %v1641_v23, %s1791_s18 }
 0x59e   :  { %1307 = vrot.lane.b32.xlu0 %v1639_v21, %s1791_s18 }
 0x60d   :  { %v1179_v24 = vpop.xlane.xlu1 %1178 }
 0x60e   :  { %v1183_v25 = vmul.f32 0.03125, %v1179_v24  ;;  %v1390_v24 = vsub.s32 6, %v1865_v7 }
 0x610   :  { %v1185_v26 = vadd.f32 1e-05, %v1183_v25  ;;  %v1396_v25 = vsub.s32 7, %v1865_v7 }
 0x611   :  { %v1182_v27 = vpop.xlane.xlu0 %1181  ;;  %v1310_v35 = vpop.permute.xlu1 %1309 }
 0x612   :  { %1674 = vrsqrt.f32 %v1185_v26  ;;  %v1184_v28 = vmul.f32 0.03125, %v1182_v27  ;;  %1608 = vmatpush3.bf16.msra.mxu1 %v1310_v35  ;;  %v1391_v26 = vrot.slane %v1868_v9, %v1390_v24 }
 0x613   :  { %1609 = vmatprep.subr.bf16.mxu1 %v1798_v0 }
 0x614   :  { %v1186_v29 = vadd.f32 1e-05, %v1184_v28 }
 0x615   :  { %v1308_v36 = vpop.permute.xlu0 %1307  ;;  %v1306_v45 = vpop.permute.xlu1 %1305 }
 0x616   :  { %1676 = vrsqrt.f32 %v1186_v29  ;;  %1610 = vmatpush3.bf16.msra.mxu1 %v1308_v36  ;;  %v1397_v29 = vrot.slane %v1868_v9, %v1396_v25 }
 0x617   :  { %1611 = vmatprep.subr.bf16.mxu1 %v1798_v0 }
 0x619   :  { %v1304_v46 = vpop.permute.xlu1 %1303 }
 0x61a   :  { %1612 = vmatpush3.bf16.msra.mxu1 %v1306_v45 }
 0x61b   :  { %1613 = vmatprep.subr.bf16.mxu1 %v1798_v0  ;;  %v1282_v0 = vrot.slane %v1868_v9, %v1281_v58 }
 0x61e   :  { %1614 = vmatpush3.bf16.msra.mxu1 %v1304_v46 }
 0x61f   :  { %v1675_v31 = vpop.eup %1674 }
 0x620   :  { %v1189_v32 = vmul.f32 %v1675_v31, %v1173_v12 }
 0x622   :  { %v1195_v39 = vmul.f32 %v1194_v33, %v1189_v32 }
 0x623   :  { %v1677_v37 = vpop.eup %1676 }
 0x624   :  { %v1190_v38 = vmul.f32 %v1677_v37, %v1174_v16  ;;  %v1201_v42 = vadd.f32 %v1200_v40, %v1195_v39 }
 0x626   :  { %v1196_v41 = vmul.f32 %v1194_v33, %v1190_v38 }
 0x628   :  { %v1202_v43 = vadd.f32 %v1200_v40, %v1196_v41 }
 0x62a   :  { %v1203_v44 = vpack.c.bf16 %v1202_v43, %v1201_v42 }
 0x62c   :  { %1604 = vmatmul.mubr.msk.bf16.vlgmr.msra.gmra.mxu0 %vm100_vm1, %v1203_v44 }
 0x6ec   :  { %v1261_v49 = vpop.f32.mrf.mxu0 }
 0x6ed   :  { %v1262_v51 = vadd.f32 %v1261_v49, %v1211_v48 }
 0x6ee   :  { %v1605_v50 = vpop.f32.mrf.mxu0 }
 0x6ef   :  { %v1268_v55 = vmax.f32 %v1262_v51, 0.0 }
 0x6f0   :  { %v1264_v52 = vpop.f32.mrf.mxu0 }
 0x6f1   :  { %v1265_v53 = vadd.f32 %v1264_v52, %v1211_v48 }
 0x6f2   :  { %v1606_v54 = vpop.f32.mrf.mxu0 }
 0x6f3   :  { %v1269_v56 = vmax.f32 %v1265_v53, 0.0 }
 0x6f5   :  { %v1270_v57 = vpack.c.bf16 %v1269_v56, %v1268_v55 }
 0x6f7   :  { %1616 = vmatmul.mubr.msk.bf16.vlgmr.msra.gmra.mxu1 %vm1315_vm5, %v1270_v57 }
 0x7b7   :  { %v1353_v59 = vpop.f32.mrf.mxu1 }
 0x7b8   :  { %v1354_v60 = vadd.f32 %v1353_v59, %v1282_v0 }
 0x7b9   :  { %v1617_v61 = vpop.f32.mrf.mxu1 }
 0x7ba   :  { %v1360_v62 = vadd.f32 %v1354_v60, %v1201_v42 }
 0x7bb   :  { %v1356_v63 = vpop.f32.mrf.mxu1 }
 0x7bc   :  { %v1357_v1 = vadd.f32 %v1356_v63, %v1282_v0  ;;  %v1362_v2 = vsel %vm100_vm1, %v1360_v62, 0.0 }
 0x7bd   :  { %1363 = vadd.xlane.f32.xlu0 %v1362_v2  ;;  %v1618_v5 = vpop.f32.mrf.mxu1 }
 0x7be   :  { %v1361_v6 = vadd.f32 %v1357_v1, %v1202_v43 }
 0x7c0   :  { %v1365_v8 = vsel %vm100_vm1, %v1361_v6, 0.0 }
 0x7c1   :  { %1366 = vadd.xlane.f32.xlu1 %v1365_v8 }
 0x846   :  { %v1364_v10 = vpop.xlane.xlu0 %1363 }
 0x847   :  { %v1368_v11 = vmul.f32 0.03125, %v1364_v10 }
 0x849   :  { %v1370_v12 = vsub.f32 %v1360_v62, %v1368_v11 }
 0x84a   :  { %v1367_v13 = vpop.xlane.xlu1 %1366 }
 0x84b   :  { %v1369_v14 = vmul.f32 0.03125, %v1367_v13  ;;  %v1372_v15 = vmul.f32 %v1370_v12, %v1370_v12 }
 0x84d   :  { %v1371_v16 = vsub.f32 %v1361_v6, %v1369_v14  ;;  %v1374_v17 = vsel %vm100_vm1, %v1372_v15, 0.0 }
 0x84e   :  { %1375 = vadd.xlane.f32.xlu0 %v1374_v17 }
 0x84f   :  { %v1373_v3 = vmul.f32 %v1371_v16, %v1371_v16 }
 0x851   :  { %v1377_v18 = vsel %vm100_vm1, %v1373_v3, 0.0 }
 0x852   :  { %1378 = vadd.xlane.f32.xlu0 %v1377_v18 }
 0x8d7   :  { %v1376_v19 = vpop.xlane.xlu0 %1375 }
 0x8d8   :  { %v1380_v4 = vmul.f32 0.03125, %v1376_v19 }
 0x8da   :  { %v1382_v20 = vadd.f32 1e-05, %v1380_v4 }
 0x8db   :  { %v1379_v21 = vpop.xlane.xlu0 %1378 }
 0x8dc   :  { %1678 = vrsqrt.f32 %v1382_v20  ;;  %v1381_v22 = vmul.f32 0.03125, %v1379_v21 }
 0x8de   :  { %v1383_v23 = vadd.f32 1e-05, %v1381_v22 }
 0x8e0   :  { %1680 = vrsqrt.f32 %v1383_v23 }
 0x8e9   :  { %v1679_v27 = vpop.eup %1678 }
 0x8ea   :  { %v1386_v28 = vmul.f32 %v1679_v27, %v1370_v12 }
 0x8ec   :  { %v1392_v30 = vmul.f32 %v1391_v26, %v1386_v28 }
 0x8ed   :  { %v1681_v31 = vpop.eup %1680 }
 0x8ee   :  { %v1387_v32 = vmul.f32 %v1681_v31, %v1371_v16  ;;  %v1398_v33 = vadd.f32 %v1397_v29, %v1392_v30 }
 0x8f0   :  { %v1393_v34 = vmul.f32 %v1391_v26, %v1387_v32  ;;  %1400 = vst.msk [vmem:[#allocation10] sm:$0xff] %vm100_vm1, %v1398_v33 }
 0x8f2   :  { %v1399_v35 = vadd.f32 %v1397_v29, %v1393_v34 }
 0x8f4   :  { %1401 = vst.msk [vmem:[#allocation10 + $0x8] sm:$0xff] %vm100_vm1, %v1399_v35 }
 0x8f5   :  { %1773 = shalt.err (!%p1770_p10)
}
 0x8f6   :  { %1413 = dma.vmem_to_hbm [thread:$0]  %s1408_s14, 256, %s2016_s4, [#allocation4], %s1794_s25, %s1794_s25, %s1795_s26  }
 0x8f7   :  { %1788 = dma.done.wait [#allocation4], 256  }
 0x8f8   :  { %1789 = vsyncadd [#allocation4], 4294967040 }
 0x8f9   :  { %1417 = vsyncpa [#allocation3], 1 }
 0x8fa   :  { %1418 = vsyncpa [#allocation6], 1 }
 0x8fb   :  { %1419 = vsyncpa [#allocation9], 1 }
 0x8fc   :  { %1420 = vsyncpa [#allocation4], 1 }

</bundles_post_ra>
